<compile_context>
chip_gen: v6e
topology: v6e:2x2x1
jax: 0.10.0
libtpu: 0.0.40
codegen_flags: <defaults>
</compile_context>

<pallas_src>
import functools

import jax
import jax.numpy as jnp
from jax.experimental import pallas as pl
from jax.experimental.pallas import tpu as pltpu


def _round_up(v, m):
    return ((v + m - 1) // m) * m


def _round_down(v, m):
    return (v // m) * m


def _pad2(a, shape):
    """Zero-pad a 2-D array up to `shape`."""
    out = jnp.zeros(shape, a.dtype)
    return out.at[: a.shape[0], : a.shape[1]].set(a)


def _vmem_limit_bytes():
    """Scoped-VMEM limit derived from the physical VMEM of this chip:
    ~80 MiB on v5e/v6e (128 MiB physical), ~40 MiB on v7x (64 MiB physical)."""
    cap = 64 * 1024 * 1024                    # conservative default (v7x)
    try:
        cap = int(pltpu.get_tpu_info().vmem_capacity_bytes)
    except Exception:
        pass
    return int(min(cap * 5 // 8, 80 * 1024 * 1024))


def _lane_tile(w, cap=2048):
    """Lane (width) tile: prefer a 128-multiple that divides w exactly so the
    stores stay unmasked / lane-dense; otherwise a 128-multiple with a ragged
    edge (handled in-kernel for reductions, dropped-on-write for gating)."""
    if w <= 512:
        return w                               # single full-width tile
    d = _round_down(min(cap, w), 128)
    t = d
    while t >= 128:
        if w % t == 0:
            return t
        t -= 128
    return d


def _pick_batch_tile(n, per_batch_bytes, budget_bytes, w_tiles):
    """Batches grouped per grid step: amortize per-step overhead when the
    per-batch tile is small, while keeping >= 2 batch-blocks (when N allows)
    so the "parallel" batch axis can be split across TensorCores."""
    target = 1 << 20                           # aim for ~1 MiB of x per step
    want = max(1, min(n, target // max(per_batch_bytes, 1)))
    if w_tiles == 1 and n > 1:
        want = min(want, max(1, n // 2))       # keep two parallel batch-blocks
    best = 1
    for d in range(1, n + 1):
        if n % d == 0 and d <= want and d * per_batch_bytes <= budget_bytes:
            best = d
    return best


def _pick_row_tile(r, lane_bytes, budget_bytes):
    """Row tile for the gating pass: multiples of 8, ~2 MiB lane-dense blocks."""
    if r <= 8:
        return r
    target_rows = max(8, (2 * 1024 * 1024) // max(lane_bytes, 1))
    budget_rows = max(8, budget_bytes // max(4 * lane_bytes, 1))   # 2 arrays x 2 bufs
    tr = min(1024, _round_down(r, 8), _round_down(target_rows, 8),
             _round_down(budget_rows, 8))
    return max(8, tr)


def _buffered_spec(block_shape, index_map, nbuf):
    """BlockSpec with a deeper input pipeline when supported by this jax."""
    if nbuf is not None and nbuf > 2:
        try:
            return pl.BlockSpec(block_shape, index_map,
                                pipeline_mode=pl.Buffered(nbuf))
        except Exception:   # older jax without pipeline_mode / Buffered
            pass
    return pl.BlockSpec(block_shape, index_map)


# -----------------------------------------------------------------------------
# Kernel A: per-batch streaming reductions over x (batch axis is "parallel")
# -----------------------------------------------------------------------------
def _partials_kernel(x_ref, w1_ref, ssq_ref, xs_ref, xm_ref, *, width, tw, ragged):
    j = pl.program_id(1)                                  # W-tile index

    xf = x_ref[...].astype(jnp.float32)                   # (B_t, C, TW)

    if ragged:
        # last W tile is partial: mask out-of-range lanes (sum->0, max->-inf)
        valid = width - j * tw
        lane = jax.lax.broadcasted_iota(jnp.int32, xf.shape, 2)
        keep = lane < valid
        x_sum = jnp.where(keep, xf, 0.0)
        x_max = jnp.where(keep, xf, -jnp.inf)
    else:
        x_sum = xf
        x_max = xf

    # conv1 (1x1, bias-free -- the bias is folded back analytically in the
    # epilogue); only the per-batch sum over width of its square is kept.
    bt = x_sum.shape[0]
    w1 = jnp.broadcast_to(w1_ref[...], (bt,) + w1_ref.shape)     # (B_t, MIPp, C)
    y0 = jnp.einsum('bmc,bct->bmt', w1, x_sum,
                    preferred_element_type=jnp.float32)          # (B_t, MIPp, TW)

    @pl.when(j == 0)
    def _init():
        ssq_ref[...] = jnp.zeros(ssq_ref.shape, ssq_ref.dtype)
        xs_ref[...] = jnp.zeros(xs_ref.shape, xs_ref.dtype)
        xm_ref[...] = jnp.full(xm_ref.shape, -jnp.inf, xm_ref.dtype)

    ssq_ref[:, 0, :] += jnp.sum(y0 * y0, axis=-1)                # (B_t, MIPp)
    xs_ref[:, 0, :] += jnp.sum(x_sum, axis=-1)                   # (B_t, C)
    xm_ref[:, 0, :] = jnp.maximum(xm_ref[:, 0, :], jnp.max(x_max, axis=-1))


# -----------------------------------------------------------------------------
# Kernel B: mem-bound gating pass  out[r, w] = x[r, w] * a[r]  (native dtype)
# -----------------------------------------------------------------------------
def _gating_kernel(x_ref, a_ref, o_ref):
    o_ref[...] = x_ref[...] * a_ref[...]


# -----------------------------------------------------------------------------
# Epilogue (plain JAX): BN batch stats + MetaAconC + conv_w + sigmoid -> gate
# -----------------------------------------------------------------------------
def _gate_epilogue(ssq, xs, xm, params, width):
    (W1, b1, g, be, p1, p2, F1, f1b, F2, f2b, Ww, wb) = [
        p.astype(jnp.float32) for p in params]
    n = xs.shape[0]
    L = float(width + 1)
    cnt = float(n) * L
    b1v, gv, bev = b1[:, 0], g[:, 0], be[:, 0]
    p1v, p2v = p1[:, 0], p2[:, 0]

    # by linearity: sum_w conv1(x) = W1 @ sum_w x ; conv1 of the pooled column
    ysum0 = xs @ W1.T                                  # (N, MIP), no bias
    y20 = xm @ W1.T                                    # (N, MIP), no bias
    y2 = y20 + b1v                                     # pooled column with bias

    # per-batch sum of conv1 output over the full (W + 1) concat length
    sy = ysum0 + float(width) * b1v + y2

    # BatchNorm1d batch statistics (biased variance), centered around b1
    s_tot = jnp.sum(sy, axis=0)
    ssq_tot = jnp.sum(ssq + y20 * y20, axis=0)
    mean = s_tot / cnt
    meanc = mean - b1v
    var = ssq_tot / cnt - meanc * meanc
    inv = jax.lax.rsqrt(var + 1e-5)
    scale = gv * inv
    shift = bev - mean * scale

    # MetaAconC beta from the per-batch mean of the normalized activation
    m = (scale * sy + L * shift) * (1.0 / L)           # (N, MIP)
    h = m @ F1.T + f1b[:, 0]                           # (N, HID)
    beta = jax.nn.sigmoid(h @ F2.T + f2b[:, 0])        # (N, MIP)

    # MetaAconC applied to the pooled column (only piece reaching conv_w)
    y2n = scale * y2 + shift
    dpx = (p1v - p2v) * y2n
    act = dpx * jax.nn.sigmoid(beta * dpx) + p2v * y2n

    # conv_w (1x1) + sigmoid gate, batched over N
    return jax.nn.sigmoid(act @ Ww.T + wb[:, 0])       # (N, OUP)


# -----------------------------------------------------------------------------
# Wrapper
# -----------------------------------------------------------------------------
def coordatt_forward(x, params):
    (W1, b1, g, be, p1, p2, F1, f1b, F2, f2b, Ww, wb) = params
    N, C, W = x.shape
    MIP = W1.shape[0]
    OUP = Ww.shape[0]
    assert OUP == C, "gating broadcast (identity * a_w) requires oup == inp"

    f32 = jnp.float32
    itemsize = jnp.dtype(x.dtype).itemsize
    MIPp = _round_up(MIP, 8)
    W1p = _pad2(W1.astype(f32), (MIPp, C))     # only conv1's weight enters Kernel A

    vmem_limit = _vmem_limit_bytes()
    blk_budget = vmem_limit // 2               # budget for the pipelined x blocks

    # ---------------- Kernel A tiling: x block (B_t, C, TW) ------------------
    TW = _lane_tile(W)
    while TW > 128 and 3 * C * TW * itemsize > blk_budget:
        TW = max(128, _round_down(TW // 2, 128))
    WT = pl.cdiv(W, TW)
    ragged = (W % TW) != 0
    nbuf_a = 3 if WT >= 3 else 2               # deeper input pipeline only if useful
    B_t = _pick_batch_tile(N, nbuf_a * C * TW * itemsize, blk_budget, WT)
    NB = N // B_t

    part_shapes = (
        jax.ShapeDtypeStruct((N, 1, MIPp), f32),   # ssq: per-batch sum_w (conv1-b1)^2
        jax.ShapeDtypeStruct((N, 1, C), f32),      # xs : per-batch sum_w x
        jax.ShapeDtypeStruct((N, 1, C), f32),      # xm : per-batch max_w x
    )
    part_specs = [
        pl.BlockSpec((B_t, 1, MIPp), lambda i, j: (i, 0, 0)),
        pl.BlockSpec((B_t, 1, C), lambda i, j: (i, 0, 0)),
        pl.BlockSpec((B_t, 1, C), lambda i, j: (i, 0, 0)),
    ]

    ssq, xs, xm = pl.pallas_call(
        functools.partial(_partials_kernel, width=W, tw=TW, ragged=ragged),
        out_shape=part_shapes,
        grid=(NB, WT),
        in_specs=[
            _buffered_spec((B_t, C, TW), lambda i, j: (i, 0, j), nbuf_a),
            pl.BlockSpec((MIPp, C), lambda i, j: (0, 0)),
        ],
        out_specs=part_specs,
        compiler_params=pltpu.CompilerParams(
            # batch-block axis parallel (megacore / 2 TCs); W axis is the reduction
            dimension_semantics=("parallel", "arbitrary"),
            vmem_limit_bytes=vmem_limit),
        cost_estimate=pl.CostEstimate(
            flops=2 * N * C * W * MIPp,
            transcendentals=0,
            bytes_accessed=int(x.size) * itemsize
            + N * (MIPp + 2 * C) * 4 + MIPp * C * 4),
    )(x, W1p)

    # ----------- Epilogue: tiny, batched over N, plain JAX -------------------
    gate = _gate_epilogue(ssq[:, 0, :MIP], xs[:, 0, :], xm[:, 0, :], params, W)
    a_rows = gate.astype(x.dtype).reshape(N * C, 1)    # per-(n, c) scalar gate

    # ---------------- Kernel B: out = x * gate (flattened to (N*C, W)) -------
    R = N * C
    x2 = x.reshape(R, W)
    TWb = _lane_tile(W)
    TR = _pick_row_tile(R, TWb * itemsize, vmem_limit)

    out2 = pl.pallas_call(
        _gating_kernel,
        out_shape=jax.ShapeDtypeStruct((R, W), x.dtype),
        grid=(pl.cdiv(R, TR), pl.cdiv(W, TWb)),
        in_specs=[pl.BlockSpec((TR, TWb), lambda r, c: (r, c)),
                  pl.BlockSpec((TR, 1), lambda r, c: (r, 0))],
        out_specs=pl.BlockSpec((TR, TWb), lambda r, c: (r, c)),
        compiler_params=pltpu.CompilerParams(
            dimension_semantics=("parallel", "parallel"),
            vmem_limit_bytes=vmem_limit),
        cost_estimate=pl.CostEstimate(
            flops=R * W,
            transcendentals=0,
            bytes_accessed=2 * int(x.size) * itemsize + R * itemsize),
    )(x2, a_rows)

    return out2.reshape(N, C, W)


# -----------------------------------------------------------------------------
# Pure-JAX reference mirroring the PyTorch forward (correctness check)
# -----------------------------------------------------------------------------
def coordatt_ref(x, params):
    (W1, b1, g, be, p1, p2, F1, f1b, F2, f2b, Ww, wb) = params
    N, C, Wd = x.shape
    xmax = jnp.max(x, axis=-1, keepdims=True)
    y = jnp.concatenate([x, xmax], axis=-1)                       # (N, C, W+1)
    y = jnp.einsum('oc,ncl->nol', W1, y) + b1[None]
    mean = jnp.mean(y, axis=(0, 2), keepdims=True)
    var = jnp.mean((y - mean) ** 2, axis=(0, 2), keepdims=True)   # biased
    y = (y - mean) / jnp.sqrt(var + 1e-5) * g[None] + be[None]
    m = jnp.mean(y, axis=-1, keepdims=True)
    h = jnp.einsum('hm,nml->nhl', F1, m) + f1b[None]
    bsig = jax.nn.sigmoid(jnp.einsum('mh,nhl->nml', F2, h) + f2b[None])
    dpx = (p1 - p2)[None] * y
    ya = dpx * jax.nn.sigmoid(bsig * dpx) + p2[None] * y
    xc = ya[:, :, Wd:Wd + 1]
    a = jax.nn.sigmoid(jnp.einsum('om,nml->nol', Ww, xc) + wb[None])
    return x * a


def make_params(key, inp, oup, reduction=32, r=16):
    mip = max(6, inp // reduction)
    hid = max(r, mip // r)
    ks = jax.random.split(key, 12)
    f32 = jnp.float32
    W1 = 0.3 * jax.random.normal(ks[0], (mip, inp), f32)     # conv1 weight (k=1)
    b1 = 0.1 * jax.random.normal(ks[1], (mip, 1), f32)
    g = 1.0 + 0.1 * jax.random.normal(ks[2], (mip, 1), f32)  # bn1 gamma
    be = 0.1 * jax.random.normal(ks[3], (mip, 1), f32)       # bn1 beta
    p1 = jax.random.normal(ks[4], (mip, 1), f32)             # MetaAconC p1
    p2 = jax.random.normal(ks[5], (mip, 1), f32)             # MetaAconC p2
    F1 = 0.3 * jax.random.normal(ks[6], (hid, mip), f32)     # MetaAconC fc1
    f1b = 0.1 * jax.random.normal(ks[7], (hid, 1), f32)
    F2 = 0.3 * jax.random.normal(ks[8], (mip, hid), f32)     # MetaAconC fc2
    f2b = 0.1 * jax.random.normal(ks[9], (mip, 1), f32)
    Ww = 0.3 * jax.random.normal(ks[10], (oup, mip), f32)    # conv_w weight
    wb = 0.1 * jax.random.normal(ks[11], (oup, 1), f32)
    return (W1, b1, g, be, p1, p2, F1, f1b, F2, f2b, Ww, wb)


if __name__ == "__main__":
    key = jax.random.PRNGKey(0)
    kx1, kp1, kx2, kp2 = jax.random.split(key, 4)

    fwd = jax.jit(coordatt_forward)

    # Case 1: module-spec small shape (batch=2, channels=4 (inp=oup), width=16)
    N, C, W = 2, 4, 16
    x = jax.random.normal(kx1, (N, C, W), jnp.float32)
    params = make_params(kp1, inp=C, oup=C, reduction=32)
    out = jax.block_until_ready(fwd(x, params))
    ref = coordatt_ref(x, params)
    assert out.shape == (N, C, W)
    err = float(jnp.max(jnp.abs(out - ref)))
    assert jnp.allclose(out, ref, rtol=2e-4, atol=2e-4), f"max abs err {err}"

    # Case 2: exercises batch grouping (B_t > 1) and 128-multiple lane tiles
    N2, C2, W2 = 4, 8, 256
    x2 = jax.random.normal(kx2, (N2, C2, W2), jnp.float32)
    params2 = make_params(kp2, inp=C2, oup=C2, reduction=32)
    out2 = jax.block_until_ready(fwd(x2, params2))
    ref2 = coordatt_ref(x2, params2)
    err2 = float(jnp.max(jnp.abs(out2 - ref2)))
    assert jnp.allclose(out2, ref2, rtol=2e-4, atol=2e-4), f"max abs err {err2}"

    print("KERNEL_OK")
</pallas_src>

<mosaic_0001>
module attributes {stable_mosaic.version = 11 : i64} {
  func.func @_partials_kernel(%arg0: i32, %arg1: i32, %arg2: memref<1x4x16xf32, #tpu.memory_space<vmem>>, %arg3: memref<8x4xf32, #tpu.memory_space<vmem>>, %arg4: memref<1x1x8xf32, #tpu.memory_space<vmem>>, %arg5: memref<1x1x4xf32, #tpu.memory_space<vmem>>, %arg6: memref<1x1x4xf32, #tpu.memory_space<vmem>>) attributes {dimension_semantics = [#tpu.dimension_semantics<parallel>, #tpu.dimension_semantics<arbitrary>], iteration_bounds = array<i64: 2, 1>, scalar_prefetch = 0 : i64, scratch_operands = 0 : i64, tpu.core_type = #tpu.core_type<tc>, window_params = [{transform_indices = @transform_0, window_bounds = array<i64: 1, 4, 16>}, {pipeline_mode = #tpu.pipeline_mode<synchronous>, transform_indices = @transform_1, window_bounds = array<i64: 8, 4>}, {transform_indices = @transform_2, window_bounds = array<i64: 1, 1, 8>}, {transform_indices = @transform_3, window_bounds = array<i64: 1, 1, 4>}, {transform_indices = @transform_4, window_bounds = array<i64: 1, 1, 4>}]} {
    %c0 = arith.constant 0 : index
    %c0_0 = arith.constant 0 : index
    %c0_1 = arith.constant 0 : index
    %0 = vector.load %arg2[%c0, %c0_0, %c0_1] : memref<1x4x16xf32, #tpu.memory_space<vmem>>, vector<1x4x16xf32>
    %c0_2 = arith.constant 0 : index
    %c0_3 = arith.constant 0 : index
    %1 = vector.load %arg3[%c0_2, %c0_3] : memref<8x4xf32, #tpu.memory_space<vmem>>, vector<8x4xf32>
    %2 = vector.shape_cast %1 : vector<8x4xf32> to vector<1x8x4xf32>
    "tpu.trace_start"() <{level = 10 : i32, message = "bmc,bct->bmt"}> : () -> ()
    %cst = arith.constant dense<0.000000e+00> : vector<1x8x16xf32>
    %3 = tpu.matmul %2, %0, %cst {dimension_numbers = #tpu.dot_dimension_numbers<[2], [1], [1], [2], [0, 0, 0, 1, 1, 2], [0], [0]>} : vector<1x8x4xf32>, vector<1x4x16xf32>, vector<1x8x16xf32> -> vector<1x8x16xf32>
    %c0_i32 = arith.constant 0 : i32
    "tpu.trace_stop"() : () -> ()
    %4 = arith.cmpi eq, %arg1, %c0_i32 : i32
    %5 = arith.extui %4 : i1 to i32
    %c0_i32_4 = arith.constant 0 : i32
    %6 = arith.cmpi ne, %5, %c0_i32_4 : i32
    scf.if %6 {
      %cst_26 = arith.constant 0.000000e+00 : f32
      %29 = vector.broadcast %cst_26 : f32 to vector<1x1x8xf32>
      %c0_27 = arith.constant 0 : index
      %c0_28 = arith.constant 0 : index
      %c0_29 = arith.constant 0 : index
      %30 = vector.load %arg4[%c0_27, %c0_28, %c0_29] : memref<1x1x8xf32, #tpu.memory_space<vmem>>, vector<1x1x8xf32>
      tpu.vector_store %arg4[%c0_27, %c0_28, %c0_29], %29 {strides = array<i32>} : memref<1x1x8xf32, #tpu.memory_space<vmem>>, vector<1x1x8xf32>,
      %cst_30 = arith.constant 0.000000e+00 : f32
      %31 = vector.broadcast %cst_30 : f32 to vector<1x1x4xf32>
      %c0_31 = arith.constant 0 : index
      %c0_32 = arith.constant 0 : index
      %c0_33 = arith.constant 0 : index
      %32 = vector.load %arg5[%c0_31, %c0_32, %c0_33] : memref<1x1x4xf32, #tpu.memory_space<vmem>>, vector<1x1x4xf32>
      tpu.vector_store %arg5[%c0_31, %c0_32, %c0_33], %31 {strides = array<i32>} : memref<1x1x4xf32, #tpu.memory_space<vmem>>, vector<1x1x4xf32>,
      %cst_34 = arith.constant 0xFF800000 : f32
      %33 = vector.broadcast %cst_34 : f32 to vector<1x1x4xf32>
      %c0_35 = arith.constant 0 : index
      %c0_36 = arith.constant 0 : index
      %c0_37 = arith.constant 0 : index
      %34 = vector.load %arg6[%c0_35, %c0_36, %c0_37] : memref<1x1x4xf32, #tpu.memory_space<vmem>>, vector<1x1x4xf32>
      tpu.vector_store %arg6[%c0_35, %c0_36, %c0_37], %33 {strides = array<i32>} : memref<1x1x4xf32, #tpu.memory_space<vmem>>, vector<1x1x4xf32>,
    } else {
    }
    %c0_5 = arith.constant 0 : index
    %c0_6 = arith.constant 0 : index
    %c0_7 = arith.constant 0 : index
    %7 = vector.load %arg4[%c0_5, %c0_6, %c0_7] : memref<1x1x8xf32, #tpu.memory_space<vmem>>, vector<1x1x8xf32>
    %8 = vector.shape_cast %7 : vector<1x1x8xf32> to vector<1x8xf32>
    %9 = arith.mulf %3, %3 : vector<1x8x16xf32>
    %cst_8 = arith.constant dense<0.000000e+00> : vector<1x8xf32>
    %10 = vector.multi_reduction <add>, %9, %cst_8 [2] : vector<1x8x16xf32> to vector<1x8xf32>
    %11 = arith.addf %8, %10 : vector<1x8xf32>
    %c0_9 = arith.constant 0 : index
    %c0_10 = arith.constant 0 : index
    %c0_11 = arith.constant 0 : index
    %12 = vector.load %arg4[%c0_9, %c0_10, %c0_11] : memref<1x1x8xf32, #tpu.memory_space<vmem>>, vector<1x1x8xf32>
    %13 = vector.shape_cast %12 : vector<1x1x8xf32> to vector<1x8xf32>
    %14 = vector.shape_cast %11 : vector<1x8xf32> to vector<1x1x8xf32>
    tpu.vector_store %arg4[%c0_9, %c0_10, %c0_11], %14 {strides = array<i32>} : memref<1x1x8xf32, #tpu.memory_space<vmem>>, vector<1x1x8xf32>,
    %c0_12 = arith.constant 0 : index
    %c0_13 = arith.constant 0 : index
    %c0_14 = arith.constant 0 : index
    %15 = vector.load %arg5[%c0_12, %c0_13, %c0_14] : memref<1x1x4xf32, #tpu.memory_space<vmem>>, vector<1x1x4xf32>
    %16 = vector.shape_cast %15 : vector<1x1x4xf32> to vector<1x4xf32>
    %cst_15 = arith.constant dense<0.000000e+00> : vector<1x4xf32>
    %17 = vector.multi_reduction <add>, %0, %cst_15 [2] : vector<1x4x16xf32> to vector<1x4xf32>
    %18 = arith.addf %16, %17 : vector<1x4xf32>
    %c0_16 = arith.constant 0 : index
    %c0_17 = arith.constant 0 : index
    %c0_18 = arith.constant 0 : index
    %19 = vector.load %arg5[%c0_16, %c0_17, %c0_18] : memref<1x1x4xf32, #tpu.memory_space<vmem>>, vector<1x1x4xf32>
    %20 = vector.shape_cast %19 : vector<1x1x4xf32> to vector<1x4xf32>
    %21 = vector.shape_cast %18 : vector<1x4xf32> to vector<1x1x4xf32>
    tpu.vector_store %arg5[%c0_16, %c0_17, %c0_18], %21 {strides = array<i32>} : memref<1x1x4xf32, #tpu.memory_space<vmem>>, vector<1x1x4xf32>,
    %c0_19 = arith.constant 0 : index
    %c0_20 = arith.constant 0 : index
    %c0_21 = arith.constant 0 : index
    %22 = vector.load %arg6[%c0_19, %c0_20, %c0_21] : memref<1x1x4xf32, #tpu.memory_space<vmem>>, vector<1x1x4xf32>
    %23 = vector.shape_cast %22 : vector<1x1x4xf32> to vector<1x4xf32>
    %cst_22 = arith.constant dense<0xFF800000> : vector<1x4xf32>
    %24 = vector.multi_reduction <maximumf>, %0, %cst_22 [2] : vector<1x4x16xf32> to vector<1x4xf32>
    %25 = arith.maximumf %23, %24 : vector<1x4xf32>
    %c0_23 = arith.constant 0 : index
    %c0_24 = arith.constant 0 : index
    %c0_25 = arith.constant 0 : index
    %26 = vector.load %arg6[%c0_23, %c0_24, %c0_25] : memref<1x1x4xf32, #tpu.memory_space<vmem>>, vector<1x1x4xf32>
    %27 = vector.shape_cast %26 : vector<1x1x4xf32> to vector<1x4xf32>
    %28 = vector.shape_cast %25 : vector<1x4xf32> to vector<1x1x4xf32>
    tpu.vector_store %arg6[%c0_23, %c0_24, %c0_25], %28 {strides = array<i32>} : memref<1x1x4xf32, #tpu.memory_space<vmem>>, vector<1x1x4xf32>,
    return
  }
  func.func @transform_0(%arg0: i32, %arg1: i32) -> (i32, i32, i32) {
    %c0_i32 = arith.constant 0 : i32
    %c0_i32_0 = arith.constant 0 : i32
    return %arg0, %c0_i32, %arg1 : i32, i32, i32
  }
  func.func @transform_1(%arg0: i32, %arg1: i32) -> (i32, i32) {
    %c0_i32 = arith.constant 0 : i32
    %c0_i32_0 = arith.constant 0 : i32
    %c0_i32_1 = arith.constant 0 : i32
    return %c0_i32, %c0_i32_0 : i32, i32
  }
  func.func @transform_2(%arg0: i32, %arg1: i32) -> (i32, i32, i32) {
    %c0_i32 = arith.constant 0 : i32
    %c0_i32_0 = arith.constant 0 : i32
    %c0_i32_1 = arith.constant 0 : i32
    return %arg0, %c0_i32, %c0_i32_0 : i32, i32, i32
  }
  func.func @transform_3(%arg0: i32, %arg1: i32) -> (i32, i32, i32) {
    %c0_i32 = arith.constant 0 : i32
    %c0_i32_0 = arith.constant 0 : i32
    %c0_i32_1 = arith.constant 0 : i32
    return %arg0, %c0_i32, %c0_i32_0 : i32, i32, i32
  }
  func.func @transform_4(%arg0: i32, %arg1: i32) -> (i32, i32, i32) {
    %c0_i32 = arith.constant 0 : i32
    %c0_i32_0 = arith.constant 0 : i32
    %c0_i32_1 = arith.constant 0 : i32
    return %arg0, %c0_i32, %c0_i32_0 : i32, i32, i32
  }
}

module attributes {stable_mosaic.version = 11 : i64} {
  func.func @_gating_kernel(%arg0: i32, %arg1: i32, %arg2: memref<8x16xf32, #tpu.memory_space<vmem>>, %arg3: memref<8x1xf32, #tpu.memory_space<vmem>>, %arg4: memref<8x16xf32, #tpu.memory_space<vmem>>) attributes {dimension_semantics = [#tpu.dimension_semantics<parallel>, #tpu.dimension_semantics<parallel>], iteration_bounds = array<i64: 1, 1>, scalar_prefetch = 0 : i64, scratch_operands = 0 : i64, tpu.core_type = #tpu.core_type<tc>, window_params = [{transform_indices = @transform_0, window_bounds = array<i64: 8, 16>}, {transform_indices = @transform_1, window_bounds = array<i64: 8, 1>}, {transform_indices = @transform_2, window_bounds = array<i64: 8, 16>}]} {
    %c0 = arith.constant 0 : index
    %c0_0 = arith.constant 0 : index
    %0 = vector.load %arg2[%c0, %c0_0] : memref<8x16xf32, #tpu.memory_space<vmem>>, vector<8x16xf32>
    %c0_1 = arith.constant 0 : index
    %c0_2 = arith.constant 0 : index
    %1 = vector.load %arg3[%c0_1, %c0_2] : memref<8x1xf32, #tpu.memory_space<vmem>>, vector<8x1xf32>
    %2 = vector.broadcast %1 : vector<8x1xf32> to vector<8x16xf32>
    %3 = arith.mulf %0, %2 : vector<8x16xf32>
    %c0_3 = arith.constant 0 : index
    %c0_4 = arith.constant 0 : index
    %4 = vector.load %arg4[%c0_3, %c0_4] : memref<8x16xf32, #tpu.memory_space<vmem>>, vector<8x16xf32>
    tpu.vector_store %arg4[%c0_3, %c0_4], %3 {strides = array<i32>} : memref<8x16xf32, #tpu.memory_space<vmem>>, vector<8x16xf32>,
    return
  }
  func.func @transform_0(%arg0: i32, %arg1: i32) -> (i32, i32) {
    %c0_i32 = arith.constant 0 : i32
    return %arg0, %arg1 : i32, i32
  }
  func.func @transform_1(%arg0: i32, %arg1: i32) -> (i32, i32) {
    %c0_i32 = arith.constant 0 : i32
    %c0_i32_0 = arith.constant 0 : i32
    return %arg0, %c0_i32 : i32, i32
  }
  func.func @transform_2(%arg0: i32, %arg1: i32) -> (i32, i32) {
    %c0_i32 = arith.constant 0 : i32
    return %arg0, %arg1 : i32, i32
  }
}

</mosaic_0001>

<bundles_post_ra>
// kernel: coordatt_forward.2
= control target key start
LH: loop header
LB: loop body
LE: loop exit
PB: predicated region body
PF: predicated region fallthrough
CT: control target
= control target key end

     0   :  { %s785_s15 = smov 0   ;;  %s787_s16 = smov 0   ;;  %s874_s0 = inlined_call_operand.vmem [shape: f32[2,4,16], index: 0, kind: input, shape index: {}]   ;;  %s875_s1 = inlined_call_operand.vmem [shape: f32[8,4], index: 1, kind: input, shape index: {}]   ;;  %s876_s2 = inlined_call_operand.vmem [shape: f32[2,1,8], index: 2, kind: output, shape index: {0}]   ;;  %s877_s3 = inlined_call_operand.vmem [shape: f32[2,1,4], index: 3, kind: output, shape index: {1}]   ;;  %s878_s4 = inlined_call_operand.vmem [shape: f32[2,1,4], index: 4, kind: output, shape index: {2}]  }
   0x1   :  { %s789_s17 = smov 0  }
   0x2 LB: > { %s27_s18 = sadd.s32 1, %s749_s16  ;;  %p687_p0 = scmp.ge.s32.totalorder %s753_s17, 1  ;;  %s753_s17 = sphi %s789_s17, %s15_s17   ;;  %s749_s16 = sphi %s787_s16, %s880_s16   ;;  %s745_s15 = sphi %s785_s15, %s879_s15  }
   0x3   : > { %p29_p1 = scmp.ge.s32.totalorder %s27_s18, 2  ;;  %p183_p2 = scmp.lt.s32.totalorder %s753_s17, 3 }
   0x5   : > { %s882_s18 = smov (%p29_p1, %s27_s18), 0  ;;  %p184_p3 = pnand %p687_p0, %p183_p2 }
   0x6   : > { %p215_p4 = scmp.lt.s32.totalorder (!%p184_p3), %s745_s15, 1 }
   0x7   : > { %187 = sbr.rel (%p184_p3) target bundleno = 502 (0x1f6), region = 28 }
   0xc   : > { %v755_v0 = vmov 0.0   ;;  %s884_s15 = smov (!%p215_p4, %s745_s15), 1  ;;  %vm315_vm0 = vcmask 57344   ;;  %vm317_vm1 = vcmask 24576   ;;  %vm756_vm2 = vmmov 0   ;;  %v232_v1 = vld [vmem:[%s875_s1] sm:$0xff] }
   0xd   : > { %695 = vmatprep.subr.mxu0 %v755_v0  ;;  %697 = vmatprep.mubr.msk.f32.mxu0 %vm756_vm2, %v755_v0  ;;  %s809_s21 = scalar_lea.vmem %s876_s2, %s884_s15  ;;  %s815_s24 = scalar_lea.vmem %s877_s3, %s884_s15  ;;  %vm237_vm3 = vcmask 1043456   ;;  %vm233_vm4 = vcmask 31744   ;;  %vm436_vm5 = vcmask 125952   ;;  %vm322_vm6 = vcmask 130048  }
   0xe   : > { %316 = vst.msk [vmem:[%s809_s21] sm:$0x1] %vm315_vm0, %v755_v0  ;;  %s688_s25 = sshll.u32 %s884_s15, 2  ;;  %v757_v9 = vmov 0   ;;  %v327_v10 = vlaneseq  ;;  %v758_v14 = vmov 1966171168   ;;  %s230_s7 = scalar_lea.vmem %s878_s4, %s884_s15 }
   0xf   : > { %318 = vst.msk [vmem:[%s815_s24] sm:$0x1] %vm317_vm1, %v755_v0  ;;  %s221_s28 = scalar_lea.vmem %s874_s0, %s688_s25  ;;  %729 = vset.pattern.permute.xlu1 %v757_v9  ;;  %730 = vset.pattern.permute.xlu0 %v757_v9  ;;  %v364_v15 = vunpack.c.l.s4 %v758_v14 }
  0x10   : > { %v231_v2 = vld [vmem:[%s221_s28] sm:$0xf]  ;;  %v328_v11 = vshrl.u32 %v327_v10, 7  ;;  %v412_v12 = vand.u32 127, %v327_v10 }
  0x11   : > { %696 = vmatpush3.msk.msra.mxu0 %vm237_vm3, %v231_v2  ;;  %v507_v3 = vsel %vm436_vm5, %v231_v2, -inf  ;;  %v437_v8 = vsel %vm436_vm5, %v231_v2, 0.0  ;;  %v365_v21 = vunpack.c.0.s8 %v364_v15 }
  0x12   : > { %698 = vmatmul.mubr.msk.f32.vlgmr.msra.gmra.mxu0 %vm233_vm4, %v232_v1  ;;  %508 = vmax.xlane.f32.xlu1 %v507_v3  ;;  %v828_v13 = vsub.s32 %v412_v12, %v328_v11  ;;  %v329_v17 = vsub.s32 0, %v328_v11  ;;  %v333_v18 = vsub.s32 1, %v328_v11  ;;  %v337_v19 = vsub.s32 2, %v328_v11 }
  0x13   : > { %v341_v20 = vsub.s32 3, %v328_v11  ;;  %v345_v26 = vsub.s32 4, %v328_v11  ;;  %v349_v27 = vsub.s32 5, %v328_v11  ;;  %v353_v28 = vsub.s32 6, %v328_v11 }
  0x14   : > { %v357_v29 = vsub.s32 7, %v328_v11  ;;  %v830_v31 = vsub.s32 %v365_v21, %v328_v11 }
  0x15   : > { %v320_v12 = vld [vmem:[%s809_s21] sm:$0x1] }
  0x9b   : > { %v509_v16 = vpop.xlane.xlu1 %508 }
  0x9c   : > { %v514_v22 = vrot.slane %v509_v16, %v329_v17  ;;  %v518_v23 = vrot.slane %v509_v16, %v333_v18  ;;  %v522_v24 = vrot.slane %v509_v16, %v337_v19  ;;  %v526_v25 = vrot.slane %v509_v16, %v341_v20 }
  0x9e   : > { %v527_v32 = vcombine.low %v514_v22, %v518_v23  ;;  %v528_v33 = vcombine.low %v522_v24, %v526_v25 }
  0xa0   : > { %v535_v47 = vrot.slane %v527_v32, %v830_v31  ;;  %v542_v48 = vrot.slane %v528_v33, %v830_v31 }
  0xa2   : > { %v543_v1 = vcombine.low %v535_v47, %v542_v48 }
  0xd2   : > { %v307_v4 = vpop.f32.mrf.mxu0 }
  0xd3   : > { %v321_v5 = vmul.f32 %v307_v4, %v307_v4  ;;  %v759_v4 = vmov -inf  }
  0xd4   : > { %v699_v6 = vpop.f32.mrf.mxu0  ;;  %319 = vst.msk [vmem:[%s230_s7] sm:$0x1] %vm317_vm1, %v759_v4 }
  0xd5   : > { %v323_v7 = vsel %vm322_vm6, %v321_v5, 0.0  ;;  %v550_v6 = vrot.slane %v543_v1, %v830_v31 }
  0xd6   : > { %324 = vadd.xlane.f32.xlu0 %v323_v7 }
  0xda   : > { %438 = vadd.xlane.f32.xlu0 %v437_v8 }
  0xdb   : > { %v506_v22 = vld [vmem:[%s230_s7] sm:$0x1] }
 0x15f   : > { %v325_v30 = vpop.xlane.xlu0 %324 }
 0x160   : > { %v330_v34 = vrot.slane %v325_v30, %v329_v17  ;;  %v334_v35 = vrot.slane %v325_v30, %v333_v18  ;;  %v338_v36 = vrot.slane %v325_v30, %v337_v19  ;;  %v342_v37 = vrot.slane %v325_v30, %v341_v20 }
 0x161   : > { %v346_v38 = vrot.slane %v325_v30, %v345_v26  ;;  %v350_v39 = vrot.slane %v325_v30, %v349_v27  ;;  %v354_v40 = vrot.slane %v325_v30, %v353_v28  ;;  %v358_v41 = vrot.slane %v325_v30, %v357_v29 }
 0x162   : > { %v359_v42 = vcombine.low %v330_v34, %v334_v35  ;;  %v360_v43 = vcombine.low %v338_v36, %v342_v37 }
 0x163   : > { %v439_v44 = vpop.xlane.xlu0 %438  ;;  %v361_v45 = vcombine.low %v346_v38, %v350_v39  ;;  %v362_v46 = vcombine.low %v354_v40, %v358_v41 }
 0x164   : > { %v444_v49 = vrot.slane %v439_v44, %v329_v17  ;;  %v448_v50 = vrot.slane %v439_v44, %v333_v18  ;;  %v452_v51 = vrot.slane %v439_v44, %v337_v19  ;;  %v456_v52 = vrot.slane %v439_v44, %v341_v20  ;;  %v435_v18 = vld [vmem:[%s815_s24] sm:$0x1] }
 0x165   : > { %v369_v53 = vrot.slane %v359_v42, %v830_v31  ;;  %v376_v54 = vrot.slane %v360_v43, %v830_v31  ;;  %v383_v55 = vrot.slane %v361_v45, %v830_v31  ;;  %v390_v56 = vrot.slane %v362_v46, %v830_v31 }
 0x166   : > { %v457_v57 = vcombine.low %v444_v49, %v448_v50  ;;  %v458_v58 = vcombine.low %v452_v51, %v456_v52 }
 0x167   : > { %v391_v59 = vcombine.low %v369_v53, %v376_v54  ;;  %v392_v60 = vcombine.low %v383_v55, %v390_v56 }
 0x168   : > { %v465_v61 = vrot.slane %v457_v57, %v830_v31  ;;  %v472_v62 = vrot.slane %v458_v58, %v830_v31 }
 0x169   : > { %v399_v63 = vrot.slane %v391_v59, %v830_v31  ;;  %v406_v0 = vrot.slane %v392_v60, %v830_v31 }
 0x16a   : > { %v473_v2 = vcombine.low %v465_v61, %v472_v62 }
 0x16b   : > { %v407_v3 = vcombine.low %v399_v63, %v406_v0 }
 0x16c   : > { %v480_v5 = vrot.slane %v473_v2, %v830_v31 }
 0x16d   : > { %409 = vperm.xlu1 %729, %v407_v3  }
 0x16e   : > { %482 = vperm.xlu0 %730, %v480_v5  }
 0x171   : > { %552 = vperm.xlu1 %729, %v550_v6  }
 0x1e8   : > { %v410_v7 = vpop.permute.xlu1 %409 }
 0x1e9   : > { %v416_v8 = vrot.slane %v410_v7, %v828_v13  ;;  %v483_v9 = vpop.permute.xlu0 %482 }
 0x1ea   : > { %v487_v10 = vrot.slane %v483_v9, %v828_v13 }
 0x1eb   : > { %v423_v11 = vrot.slane %v416_v8, %v830_v31 }
 0x1ec   : > { %v553_v14 = vpop.permute.xlu1 %552  ;;  %v494_v15 = vrot.slane %v487_v10, %v830_v31 }
 0x1ed   : > { %v430_v16 = vrot.slane %v423_v11, %v830_v31  ;;  %v557_v17 = vrot.slane %v553_v14, %v828_v13 }
 0x1ee   : > { %v501_v19 = vrot.slane %v494_v15, %v830_v31 }
 0x1ef   : > { %v432_v20 = vadd.f32 %v430_v16, %v320_v12  ;;  %v564_v21 = vrot.slane %v557_v17, %v830_v31 }
 0x1f0   : > { %v503_v23 = vadd.f32 %v501_v19, %v435_v18 }
 0x1f1   : > { %434 = vst.msk [vmem:[%s809_s21] sm:$0x1] %vm315_vm0, %v432_v20  ;;  %v571_v24 = vrot.slane %v564_v21, %v830_v31 }
 0x1f2   : > { %505 = vst.msk [vmem:[%s815_s24] sm:$0x1] %vm317_vm1, %v503_v23 }
 0x1f3   : > { %v573_v25 = vmax.f32 %v506_v22, %v571_v24 }
 0x1f5   : > { %574 = vst.msk [vmem:[%s230_s7] sm:$0x1] %vm317_vm1, %v573_v25 }
 0x1f6 PF: > { %s15_s17 = sadd.s32 1, %s753_s17   ;;  %s879_s15 = smov %s749_s16 }
 0x1f7   : > { %p12_p5 = scmp.ge.s32.totalorder %s15_s17, 4   ;;  %s880_s16 = smov %s882_s18 }
 0x1f9   :  { %14 = sbr.rel (!%p12_p5) target bundleno = 2 (0x2), region = 86 }

// kernel: coordatt_forward.3
= control target key start
LH: loop header
LB: loop body
LE: loop exit
PB: predicated region body
PF: predicated region fallthrough
CT: control target
= control target key end

     0   :  { %s87_s0 = inlined_call_operand.vmem [shape: f32[8,16], index: 0, kind: input, shape index: {}]   ;;  %s88_s1 = inlined_call_operand.vmem [shape: f32[8,1], index: 1, kind: input, shape index: {}]   ;;  %s89_s2 = inlined_call_operand.hbm [shape: f32[8,16], index: 2, kind: output, shape index: {}]  }
   0x1   :  { %v13_v0 = vld [vmem:[%s88_s1] sm:$0xff] }
   0x2   :  { %7 = vsyncpa [#allocation3], 0  ;;  %v61_v1 = vmov 0   ;;  %v12_v2 = vld [vmem:[%s87_s0] sm:$0xff]  ;;  %s62_s13 = smov [#allocation2]   ;;  %vm20_vm0 = vcmask 130048  }
   0x3   :  { %38 = vset.pattern.permute.xlu0 %v61_v1  ;;  %s28_s14 = sshll.u32 %s62_s13, 4  ;;  %s29_s14 = int_to_ptr.vmem [resolvable:$true] %s28_s14 }
   0x4   :  { %16 = vperm.xlu0 %38, %v13_v0   ;;  %s39_s15 = scalar_lea.vmem %s29_s14, 128  ;;  %p44_p1 = scmp.lt.s32.totalorder %s29_s14, %s29_s14 }
   0x5   :  { %p40_p0 = scmp.ne.s32.totalorder %s29_s14, %s39_s15  ;;  %p45_p2 = scmp.lt.s32.totalorder %s39_s15, %s39_s15 }
   0x7   :  { %p46_p3 = por %p45_p2, %p44_p1 }
   0x9   :  { %p47_p4 = pnand %p46_p3, %p40_p0 }
  0x7f   :  { %v17_v3 = vpop.permute.xlu0 %16 }
  0x80   :  { %v19_v4 = vmul.f32 %v17_v3, %v12_v2 }
  0x82   :  { %21 = vst.msk [vmem:[#allocation2] sm:$0xff] %vm20_vm0, %v19_v4 }
  0x83   :  { %50 = shalt.err (!%p47_p4)
}
  0x84   :  { %31 = dma.vmem_to_hbm [thread:$0]  %s29_s14, 128, %s89_s2, [#allocation3]  }
  0x85   :  { %59 = dma.done.wait [#allocation3], 128  }
  0x86   :  { %60 = vsyncadd [#allocation3], 4294967168 }
  0x87   :  { %35 = vsyncpa [#allocation3], 1 }

</bundles_post_ra>
